<compile_context>
chip_gen: v5e
topology: v5e:2x2
jax: 0.10.0
libtpu: 0.0.40
codegen_flags: <defaults>
</compile_context>

<pallas_src>
import jax
import jax.numpy as jnp
import numpy as np
from jax.experimental import pallas as pl
from jax.experimental.pallas import tpu as pltpu


def channel_attention_kernel(x_ref, w1t_ref, b1_ref, w2t_ref, b2_ref, o_ref):
    # x_ref block: (Bblk, C, L) -- Bblk batch rows at once.
    x = x_ref[...].astype(jnp.float32)                       # (Bblk, C, L)
    bblk = x.shape[0]

    # Adaptive avg / max pool over length (lane reductions) -> (Bblk, C)
    avg = jnp.mean(x, axis=-1)
    mx = jnp.max(x, axis=-1)

    # Fuse the two MLP passes: one (2*Bblk, C) LHS, two matmuls per tile.
    pooled = jnp.concatenate([avg, mx], axis=0)               # (2*Bblk, C)

    w1t = w1t_ref[...]                                        # (C, Cr)
    b1 = b1_ref[...]                                          # (1, Cr)
    w2t = w2t_ref[...]                                        # (Cr, C)
    b2 = b2_ref[...]                                          # (1, C)

    h = jnp.dot(pooled, w1t, preferred_element_type=jnp.float32) + b1    # (2*Bblk, Cr)
    h = jnp.maximum(h, 0.0)                                               # ReLU
    y = jnp.dot(h, w2t, preferred_element_type=jnp.float32) + b2          # (2*Bblk, C)

    attn = jax.nn.sigmoid(y[:bblk] + y[bblk:])                # (Bblk, C)
    o_ref[...] = (x * attn[:, :, None]).astype(o_ref.dtype)   # broadcast over L


def _pick_batch_block(B, C, L, itemsize, target_bytes, min_grid_steps=2):
    """Largest batch tile keeping the block ~target_bytes, while keeping at
    least `min_grid_steps` grid steps when B > 1 (megacore sharding)."""
    rows = max(1, target_bytes // max(1, C * L * itemsize))
    bblk = int(min(B, rows))
    if B > 1 and pl.cdiv(B, bblk) < min_grid_steps:
        bblk = pl.cdiv(B, min_grid_steps)
    return max(1, int(bblk))


def channel_attention(x, w1, b1, w2, b2, *, target_block_bytes=4 << 20):
    """x: (B, C, L). w1: (Cr, C), b1: (Cr,), w2: (C, Cr), b2: (C,) -> (B, C, L)."""
    B, C, L = x.shape
    Cr = w1.shape[0]

    bblk = _pick_batch_block(B, C, L, x.dtype.itemsize, target_block_bytes)
    grid = (pl.cdiv(B, bblk),)

    # Pre-transpose weights / reshape biases outside the kernel (no in-kernel
    # transposes, constant index_maps keep them VMEM-resident).
    w1t = jnp.asarray(w1).T.astype(jnp.float32)               # (C, Cr)
    w2t = jnp.asarray(w2).T.astype(jnp.float32)               # (Cr, C)
    b1r = jnp.asarray(b1).reshape(1, Cr).astype(jnp.float32)
    b2r = jnp.asarray(b2).reshape(1, C).astype(jnp.float32)

    # VMEM budget: double-buffered in + out blocks + weights + headroom,
    # capped to stay safe on v7x (64 MiB physical VMEM per TC).
    block_bytes = bblk * C * L * x.dtype.itemsize
    weight_bytes = 4 * (w1t.size + w2t.size + b1r.size + b2r.size)
    vmem_limit = int(min(40 << 20,
                         max(16 << 20, 5 * block_bytes + 4 * weight_bytes + (2 << 20))))

    return pl.pallas_call(
        channel_attention_kernel,
        out_shape=jax.ShapeDtypeStruct((B, C, L), x.dtype),
        grid_spec=pltpu.PrefetchScalarGridSpec(
            num_scalar_prefetch=0,
            grid=grid,
            in_specs=[
                pl.BlockSpec((bblk, C, L), lambda i: (i, 0, 0)),   # x batch tile
                pl.BlockSpec((C, Cr), lambda i: (0, 0)),           # w1^T (resident)
                pl.BlockSpec((1, Cr), lambda i: (0, 0)),           # b1
                pl.BlockSpec((Cr, C), lambda i: (0, 0)),           # w2^T (resident)
                pl.BlockSpec((1, C), lambda i: (0, 0)),            # b2
            ],
            out_specs=pl.BlockSpec((bblk, C, L), lambda i: (i, 0, 0)),
        ),
        compiler_params=pltpu.CompilerParams(
            dimension_semantics=("parallel",),
            vmem_limit_bytes=vmem_limit,
        ),
    )(x, w1t, b1r, w2t, b2r)


def channel_attention_ref(x, w1, b1, w2, b2):
    """Pure-JAX reference matching the PyTorch forward."""
    avg = jnp.mean(x, axis=-1)                                # (B, C)
    mx = jnp.max(x, axis=-1)                                  # (B, C)

    def mlp(v):                                               # v: (B, C)
        h = jnp.maximum(v @ w1.T + b1, 0.0)
        return h @ w2.T + b2

    attn = jax.nn.sigmoid(mlp(avg) + mlp(mx))[..., None]      # (B, C, 1)
    return x * attn


def _make_params(key, C, reduction_ratio=16):
    Cr = max(1, C // reduction_ratio)
    k1, k2, k3, k4 = jax.random.split(key, 4)
    bound1 = 1.0 / np.sqrt(C)
    bound2 = 1.0 / np.sqrt(Cr)
    w1 = jax.random.uniform(k1, (Cr, C), jnp.float32, -bound1, bound1)   # Linear(C -> Cr).weight
    b1 = jax.random.uniform(k2, (Cr,), jnp.float32, -bound1, bound1)
    w2 = jax.random.uniform(k3, (C, Cr), jnp.float32, -bound2, bound2)   # Linear(Cr -> C).weight
    b2 = jax.random.uniform(k4, (C,), jnp.float32, -bound2, bound2)
    return w1, b1, w2, b2


if __name__ == "__main__":
    key = jax.random.PRNGKey(0)
    kp, kx1, kx2 = jax.random.split(key, 3)

    # Case 1: small, divisible shapes (module-style: [batch, channels, length]).
    B, C, L = 2, 32, 128
    w1, b1, w2, b2 = _make_params(kp, C, reduction_ratio=16)
    x = jax.random.normal(kx1, (B, C, L), dtype=jnp.float32)
    out = jax.block_until_ready(channel_attention(x, w1, b1, w2, b2))
    ref = channel_attention_ref(x, w1, b1, w2, b2)
    if not np.allclose(np.asarray(out), np.asarray(ref), atol=1e-5, rtol=1e-5):
        raise AssertionError("Pallas kernel does not match reference (case 1)")

    # Case 2: batch not divisible by the batch tile (exercises partial blocks).
    B2, L2 = 3, 256
    x2 = jax.random.normal(kx2, (B2, C, L2), dtype=jnp.float32)
    out2 = jax.block_until_ready(channel_attention(x2, w1, b1, w2, b2))
    ref2 = channel_attention_ref(x2, w1, b1, w2, b2)
    if not np.allclose(np.asarray(out2), np.asarray(ref2), atol=1e-5, rtol=1e-5):
        raise AssertionError("Pallas kernel does not match reference (case 2)")

    print("KERNEL_OK")
</pallas_src>

<mosaic_0001>
module attributes {stable_mosaic.version = 11 : i64} {
  func.func @channel_attention_kernel(%arg0: i32, %arg1: memref<1x32x128xf32, #tpu.memory_space<vmem>>, %arg2: memref<32x2xf32, #tpu.memory_space<vmem>>, %arg3: memref<1x2xf32, #tpu.memory_space<vmem>>, %arg4: memref<2x32xf32, #tpu.memory_space<vmem>>, %arg5: memref<1x32xf32, #tpu.memory_space<vmem>>, %arg6: memref<1x32x128xf32, #tpu.memory_space<vmem>>) attributes {dimension_semantics = [#tpu.dimension_semantics<parallel>], iteration_bounds = array<i64: 2>, scalar_prefetch = 0 : i64, scratch_operands = 0 : i64, tpu.core_type = #tpu.core_type<tc>, window_params = [{transform_indices = @transform_0, window_bounds = array<i64: 1, 32, 128>}, {pipeline_mode = #tpu.pipeline_mode<synchronous>, transform_indices = @transform_1, window_bounds = array<i64: 32, 2>}, {pipeline_mode = #tpu.pipeline_mode<synchronous>, transform_indices = @transform_2, window_bounds = array<i64: 1, 2>}, {pipeline_mode = #tpu.pipeline_mode<synchronous>, transform_indices = @transform_3, window_bounds = array<i64: 2, 32>}, {pipeline_mode = #tpu.pipeline_mode<synchronous>, transform_indices = @transform_4, window_bounds = array<i64: 1, 32>}, {transform_indices = @transform_5, window_bounds = array<i64: 1, 32, 128>}]} {
    %c0 = arith.constant 0 : index
    %c0_0 = arith.constant 0 : index
    %c0_1 = arith.constant 0 : index
    %0 = vector.load %arg1[%c0, %c0_0, %c0_1] : memref<1x32x128xf32, #tpu.memory_space<vmem>>, vector<1x32x128xf32>
    %cst = arith.constant dense<0.000000e+00> : vector<1x32xf32>
    %1 = vector.multi_reduction <add>, %0, %cst [2] : vector<1x32x128xf32> to vector<1x32xf32>
    %cst_2 = arith.constant 1.280000e+02 : f32
    %2 = vector.broadcast %cst_2 : f32 to vector<1x32xf32>
    %3 = arith.divf %1, %2 : vector<1x32xf32>
    %cst_3 = arith.constant dense<0xFF800000> : vector<1x32xf32>
    %4 = vector.multi_reduction <maximumf>, %0, %cst_3 [2] : vector<1x32x128xf32> to vector<1x32xf32>
    %5 = tpu.concatenate %3, %4 in 0 : vector<1x32xf32>, vector<1x32xf32> -> vector<2x32xf32>
    %c0_4 = arith.constant 0 : index
    %c0_5 = arith.constant 0 : index
    %6 = vector.load %arg2[%c0_4, %c0_5] : memref<32x2xf32, #tpu.memory_space<vmem>>, vector<32x2xf32>
    %c0_6 = arith.constant 0 : index
    %c0_7 = arith.constant 0 : index
    %7 = vector.load %arg3[%c0_6, %c0_7] : memref<1x2xf32, #tpu.memory_space<vmem>>, vector<1x2xf32>
    %c0_8 = arith.constant 0 : index
    %c0_9 = arith.constant 0 : index
    %8 = vector.load %arg4[%c0_8, %c0_9] : memref<2x32xf32, #tpu.memory_space<vmem>>, vector<2x32xf32>
    %c0_10 = arith.constant 0 : index
    %c0_11 = arith.constant 0 : index
    %9 = vector.load %arg5[%c0_10, %c0_11] : memref<1x32xf32, #tpu.memory_space<vmem>>, vector<1x32xf32>
    %cst_12 = arith.constant dense<0.000000e+00> : vector<2x2xf32>
    %10 = tpu.matmul %5, %6, %cst_12 {dimension_numbers = #tpu.dot_dimension_numbers<[1], [0], [0], [1], [0, 0, 1, 1], [], []>} : vector<2x32xf32>, vector<32x2xf32>, vector<2x2xf32> -> vector<2x2xf32>
    %11 = vector.broadcast %7 : vector<1x2xf32> to vector<2x2xf32>
    %12 = arith.addf %10, %11 : vector<2x2xf32>
    %cst_13 = arith.constant 0.000000e+00 : f32
    %13 = vector.broadcast %cst_13 : f32 to vector<2x2xf32>
    %14 = arith.maximumf %12, %13 : vector<2x2xf32>
    %cst_14 = arith.constant dense<0.000000e+00> : vector<2x32xf32>
    %15 = tpu.matmul %14, %8, %cst_14 {dimension_numbers = #tpu.dot_dimension_numbers<[1], [0], [0], [1], [0, 0, 1, 1], [], []>} : vector<2x2xf32>, vector<2x32xf32>, vector<2x32xf32> -> vector<2x32xf32>
    %16 = vector.broadcast %9 : vector<1x32xf32> to vector<2x32xf32>
    %17 = arith.addf %15, %16 : vector<2x32xf32>
    %18 = vector.extract_strided_slice %17 {offsets = [0, 0], sizes = [1, 32], strides = [1, 1]} : vector<2x32xf32> to vector<1x32xf32>
    %19 = vector.extract_strided_slice %17 {offsets = [1, 0], sizes = [1, 32], strides = [1, 1]} : vector<2x32xf32> to vector<1x32xf32>
    %20 = arith.addf %18, %19 : vector<1x32xf32>
    %21 = arith.negf %20 : vector<1x32xf32>
    %22 = math.exp %21 : vector<1x32xf32>
    %cst_15 = arith.constant 1.000000e+00 : f32
    %23 = vector.broadcast %cst_15 : f32 to vector<1x32xf32>
    %24 = arith.addf %23, %22 : vector<1x32xf32>
    %25 = arith.divf %23, %24 : vector<1x32xf32>
    %26 = vector.shape_cast %25 : vector<1x32xf32> to vector<1x32x1xf32>
    %27 = vector.broadcast %26 : vector<1x32x1xf32> to vector<1x32x128xf32>
    %28 = arith.mulf %0, %27 : vector<1x32x128xf32>
    %c0_16 = arith.constant 0 : index
    %c0_17 = arith.constant 0 : index
    %c0_18 = arith.constant 0 : index
    %29 = vector.load %arg6[%c0_16, %c0_17, %c0_18] : memref<1x32x128xf32, #tpu.memory_space<vmem>>, vector<1x32x128xf32>
    tpu.vector_store %arg6[%c0_16, %c0_17, %c0_18], %28 {strides = array<i32>} : memref<1x32x128xf32, #tpu.memory_space<vmem>>, vector<1x32x128xf32>,
    return
  }
  func.func @transform_0(%arg0: i32) -> (i32, i32, i32) {
    %c0_i32 = arith.constant 0 : i32
    %c0_i32_0 = arith.constant 0 : i32
    %c0_i32_1 = arith.constant 0 : i32
    return %arg0, %c0_i32, %c0_i32_0 : i32, i32, i32
  }
  func.func @transform_1(%arg0: i32) -> (i32, i32) {
    %c0_i32 = arith.constant 0 : i32
    %c0_i32_0 = arith.constant 0 : i32
    %c0_i32_1 = arith.constant 0 : i32
    return %c0_i32, %c0_i32_0 : i32, i32
  }
  func.func @transform_2(%arg0: i32) -> (i32, i32) {
    %c0_i32 = arith.constant 0 : i32
    %c0_i32_0 = arith.constant 0 : i32
    %c0_i32_1 = arith.constant 0 : i32
    return %c0_i32, %c0_i32_0 : i32, i32
  }
  func.func @transform_3(%arg0: i32) -> (i32, i32) {
    %c0_i32 = arith.constant 0 : i32
    %c0_i32_0 = arith.constant 0 : i32
    %c0_i32_1 = arith.constant 0 : i32
    return %c0_i32, %c0_i32_0 : i32, i32
  }
  func.func @transform_4(%arg0: i32) -> (i32, i32) {
    %c0_i32 = arith.constant 0 : i32
    %c0_i32_0 = arith.constant 0 : i32
    %c0_i32_1 = arith.constant 0 : i32
    return %c0_i32, %c0_i32_0 : i32, i32
  }
  func.func @transform_5(%arg0: i32) -> (i32, i32, i32) {
    %c0_i32 = arith.constant 0 : i32
    %c0_i32_0 = arith.constant 0 : i32
    %c0_i32_1 = arith.constant 0 : i32
    return %arg0, %c0_i32, %c0_i32_0 : i32, i32, i32
  }
}

</mosaic_0001>

<bundles_post_ra>
// kernel: tpu_custom_call.1
= control target key start
LH: loop header
LB: loop body
LE: loop exit
PB: predicated region body
PF: predicated region fallthrough
CT: control target
= control target key end

     0   :  { %10 = vsyncpa [#allocation3], 0  ;;  %s910_s0 = inlined_call_operand.hbm [shape: f32[2,32,128], index: 0, kind: input, shape index: {}]   ;;  %s911_s1 = inlined_call_operand.vmem [shape: f32[32,2], index: 1, kind: input, shape index: {}]   ;;  %s912_s2 = inlined_call_operand.vmem [shape: f32[1,2], index: 2, kind: input, shape index: {}]   ;;  %s913_s3 = inlined_call_operand.vmem [shape: f32[2,32], index: 3, kind: input, shape index: {}]   ;;  %s914_s4 = inlined_call_operand.vmem [shape: f32[1,32], index: 4, kind: input, shape index: {}]   ;;  %s915_s5 = inlined_call_operand.hbm [shape: f32[2,32,128], index: 5, kind: output, shape index: {}]  }
   0x1   :  { %12 = vsyncpa [#allocation3 + $0x1], 0 }
   0x2   :  { %13 = vsyncpa [#allocation4], 0 }
   0x3   :  { %15 = vsyncpa [#allocation4 + $0x1], 0  ;;  %s738_s18 = smov 0   ;;  %s740_s19 = smov 0  }
   0x4   :  { %s742_s20 = smov 0   ;;  %s744_s21 = smov 0  }
   0x5 LB: > { %s759_s22 = sadd.s32 4294967295, %s701_s21   ;;  %s521_s23 = sadd.s32 4294967294, %s701_s21   ;;  %s701_s21 = sphi %s744_s21, %s925_s21   ;;  %s697_s20 = sphi %s742_s20, %s924_s20   ;;  %s693_s19 = sphi %s740_s19, %s923_s19   ;;  %s689_s18 = sphi %s738_s18, %s922_s18  }
   0x6   : > { %s763_s24 = sadd.s32 1, %s701_s21   ;;  %s28_s25 = sadd.s32 1, %s697_s20 }
   0x7   : > { %s25_s26 = ssub.s32 %s701_s21, %s763_s24  ;;  %p35_p0 = scmp.ne.s32.totalorder %s697_s20, %s693_s19 }
   0x8   : > { %p26_p1 = scmp.eq.s32.totalorder %s25_s26, 0  ;;  %p36_p2 = scmp.eq.s32.totalorder %s701_s21, 0 }
   0x9   : > { %p41_p3 = scmp.ne.s32.totalorder %s693_s19, %s689_s18  ;;  %p42_p4 = scmp.eq.s32.totalorder %s759_s22, 0 }
   0xa   : > { %s775_s27 = scalar_select %p26_p1, %s697_s20, %s28_s25  }
   0xb   : > { %p777_p5 = por %p36_p2, %p35_p0  ;;  %p781_p6 = por %p42_p4, %p41_p3 }
   0xc   : > { %p149_p7 = scmp.eq.s32.totalorder %s759_s22, 1  ;;  %p155_p8 = scmp.eq.s32.totalorder %s521_s23, 1 }
   0xd   : > { %p553_p10 = scmp.lt.s32.totalorder %s701_s21, 2  ;;  %s187_s7 = sand.u32 1, %s697_s20  }
   0xe   : > { %p788_p11 = por %p149_p7, %p35_p0  ;;  %p792_p12 = por %p155_p8, %p41_p3 }
   0xf   : > { %s539_s8 = sshll.u32 %s701_s21, 5  ;;  %s524_s9 = sshll.u32 %s187_s7, 5 }
  0x10   : > { %s196_s12 = scalar_lea.hbm %s910_s0, %s539_s8  ;;  %s191_s14 = scalar_lea.vmem [#allocation2], %s524_s9 }
  0x11   : > { %s197_s13 = sshll.u32 %s196_s12, 4  ;;  %s199_s15 = sshll.u32 %s191_s14, 4  ;;  %s198_s13 = int_to_ptr.hbm [resolvable:$true] %s197_s13  ;;  %s200_s15 = int_to_ptr.vmem [resolvable:$true] %s199_s15 }
  0x12   : > { %p803_p13 = pnand %p553_p10, %p777_p5  ;;  %p527_p0 = scmp.ge.s32.totalorder %s701_s21, 1 }
  0x13   : > { %p207_p1 = scmp.lt.s32.totalorder %s701_s21, 3  ;;  %s188_s17 = scalar_lea.sflag [#allocation3], %s187_s7 }
  0x14   : > { %s605_s23 = sshra.s32 %s198_s13, 4  ;;  %p609_p3 = pneg %p803_p13  ;;  %s606_s23 = int_to_ptr.hbm [resolvable:$true] %s605_s23 }
  0x15   : > { %s607_s25 = scalar_lea.hbm %s606_s23, 32  ;;  %s612_s28 = scalar_lea.hbm %s910_s0, 64 }
  0x16   : > { %p608_p2 = scmp.ne.s32.totalorder %s606_s23, %s607_s25  ;;  %p613_p5 = scmp.lt.s32.totalorder %s606_s23, %s910_s0 }
  0x17   : > { %p614_p8 = scmp.lt.s32.totalorder %s612_s28, %s607_s25 }
  0x18   : > { %p610_p4 = pnand %p609_p3, %p608_p2 }
  0x19   : > { %p615_p10 = por %p614_p8, %p613_p5 }
  0x1a   : > { %p611_p7 = pneg %p610_p4 }
  0x1c   : > { %p616_p9 = pnand %p615_p10, %p611_p7 }
  0x1e   : > { %619 = shalt.err (!%p616_p9)
}
  0x1f   : > { %s703_s7 = smov 128   ;;  %s704_s11 = smov 8  }
  0x20   : > { %548 = dma.hbm_to_vmem [thread:$0]  (!%p803_p13), %s198_s13, 512, %s200_s15, %s188_s17, %s703_s7, %s703_s7, %s704_s11  }
  0x21   : > { %p208_p2 = pnand %p527_p0, %p207_p1 }
  0x22   : > { %s824_s12 = sand.u32 (!%p208_p2), 1, %s693_s19  }
  0x23   : > { %211 = sbr.rel (%p208_p2) target bundleno = 593 (0x251), region = 40  ;;  %s528_s14 = sshll.u32 (!%p208_p2), %s824_s12, 5 }
  0x24   : > { %s214_s23 = scalar_lea.sflag (!%p208_p2), [#allocation3], %s824_s12  ;;  %s217_s25 = scalar_lea.vmem (!%p208_p2), [#allocation2], %s528_s14 }
  0x28   : > { %680 = dma.done.wait (%p781_p6), %s214_s23, 512  }
  0x29   : > { %682 = vsyncadd (%p781_p6), %s214_s23, 4294966784  ;;  %v834_v0 = vld [vmem:[%s217_s25] sm:$0xff]  ;;  %v836_v1 = vld [vmem:[%s217_s25 + $0x10] sm:$0xff]  ;;  %v705_v4 = vmov 128.0   ;;  %v280_v17 = vlaneseq  ;;  %vm285_vm1 = vcmask 130112   ;;  %vm289_vm2 = vcmask 195712  }
  0x2a   : > { %268 = vmax.xlane.f32.xlu2 %v834_v0  ;;  %249 = vadd.xlane.f32.xlu0 %v834_v0  ;;  %v841_v2 = vld [vmem:[%s217_s25 + $0x8] sm:$0xff]  ;;  %v843_v3 = vld [vmem:[%s217_s25 + $0x18] sm:$0xff]  ;;  %599 = vrcp.f32 %v705_v4  ;;  %v312_v6 = vld [vmem:[%s911_s1 + $0x10] sm:$0xff]  ;;  %vm293_vm3 = vcmask 261312   ;;  %vm308_vm4 = vcmask 1040384   ;;  %vm320_vm5 = vcmask 261120  }
  0x2b   : > { %253 = vadd.xlane.f32.xlu1 %v836_v1  ;;  %v313_v5 = vld [vmem:[%s911_s1 + $0x18] sm:$0xff]  ;;  %v311_v8 = vld [vmem:[%s911_s1 + $0x8] sm:$0xff]  ;;  %v310_v9 = vld [vmem:[%s911_s1] sm:$0xff]  ;;  %v281_v19 = vand.u32 127, %v280_v17  ;;  %vm352_vm6 = vcmask 1041408   ;;  %vm348_vm7 = vcmask 15360  }
  0x2c   : > { %336 = vmatpush.msra.mxu0 %v313_v5  ;;  %v315_v47 = vld [vmem:[%s913_s3] sm:$0x3]  ;;  %v401_v52 = vshrl.u32 %v280_v17, 7  ;;  %s244_s29 = scalar_lea.vmem [#allocation5], %s528_s14  ;;  %s540_s13 = sshll.u32 %s759_s22, 5 }
  0x2d   : > { %v283_v22 = vadd.s32 4294967288, %v281_v19  ;;  %v287_v25 = vadd.s32 4294967280, %v281_v19  ;;  %v291_v30 = vadd.s32 4294967272, %v281_v19  ;;  %531 = vmatpush.msk.msra.mxu1 %vm352_vm6, %v315_v47  ;;  %v597_v48 = vld [vmem:[%s912_s2] ss:$0 sm:$0xff]  ;;  %s444_s17 = scalar_lea.hbm %s915_s5, %s540_s13  ;;  %s445_s26 = sshll.u32 %s244_s29, 4  ;;  %s446_s26 = int_to_ptr.vmem [resolvable:$true] %s445_s26 }
  0x2e   : > { %337 = vmatpush.msra.mxu0 %v312_v6  ;;  %592 = vset.pattern.permute.xlu2 %v401_v52  ;;  %v414_v53 = vadd.s32 16, %v401_v52  ;;  %v408_v54 = vadd.s32 8, %v401_v52  ;;  %v598_v55 = vld [vmem:[%s914_s4] ss:$0 sm:$0xff]  ;;  %s447_s8 = sshll.u32 %s444_s17, 4  ;;  %s433_s22 = scalar_lea.sflag [#allocation4], %s824_s12  ;;  %s448_s8 = int_to_ptr.hbm [resolvable:$true] %s447_s8 }
  0x2f   : > { %s649_s14 = sshra.s32 %s448_s8, 4  ;;  %s655_s7 = scalar_lea.hbm %s915_s5, 64  ;;  %s650_s14 = int_to_ptr.hbm [resolvable:$true] %s649_s14 }
  0x30   : > { %v600_v7 = vpop.eup %599  ;;  %338 = vmatpush.msra.mxu0 %v311_v8  ;;  %594 = vset.pattern.permute.xlu1 %v414_v53  ;;  %s651_s28 = scalar_lea.hbm %s650_s14, 32  ;;  %p656_p0 = scmp.lt.s32.totalorder %s650_s14, %s915_s5 }
  0x31   : > { %v258_v10 = vmul.f32 128.0, %v600_v7  ;;  %vm262_vm0 = vweird.f32 %v600_v7  ;;  %593 = vset.pattern.permute.xlu0 %v408_v54  ;;  %p652_p6 = scmp.ne.s32.totalorder %s650_s14, %s651_s28  ;;  %p657_p1 = scmp.lt.s32.totalorder %s655_s7, %s651_s28 }
  0x32   : > { %270 = vmax.xlane.f32.xlu2 %v841_v2  ;;  %251 = vadd.xlane.f32.xlu0 %v841_v2 }
  0x33   : > { %255 = vadd.xlane.f32.xlu1 %v843_v3  ;;  %339 = vmatpush.msra.mxu0 %v310_v9  ;;  %v259_v11 = vsub.f32 1.0, %v258_v10  ;;  %p653_p9 = pnand %p652_p6, %p788_p11  ;;  %p658_p3 = por %p657_p1, %p656_p0 }
  0x35   : > { %v260_v12 = vmul.f32 %v600_v7, %v259_v11  ;;  %p654_p13 = pneg %p653_p9 }
  0x37   : > { %v261_v15 = vadd.f32 %v600_v7, %v260_v12  ;;  %p659_p4 = pnand %p658_p3, %p654_p13 }
  0x39   : > { %v263_v18 = vsel %vm262_vm0, %v600_v7, %v261_v15 }
  0x3a   : > { %272 = vmax.xlane.f32.xlu0 %v836_v1 }
  0x3b   : > { %274 = vmax.xlane.f32.xlu1 %v843_v3 }
  0x9d   : > { %v250_v13 = vpop.xlane.xlu0 %249  ;;  %v269_v14 = vpop.xlane.xlu2 %268 }
  0x9e   : > { %v254_v16 = vpop.xlane.xlu1 %253  ;;  %v264_v20 = vmul.f32 %v263_v18, %v250_v13  ;;  %v300_v32 = vperm.slane %v269_v14, %v281_v19  ;;  %v420_v14 = vadd.s32 24, %v401_v52 }
  0x9f   : > { %v266_v26 = vmul.f32 %v263_v18, %v254_v16 }
  0xa0   : > { %v282_v29 = vperm.slane %v264_v20, %v281_v19 }
  0xa1   : > { %v288_v35 = vperm.slane %v266_v26, %v287_v25 }
  0xa5   : > { %v252_v21 = vpop.xlane.xlu0 %251  ;;  %v271_v27 = vpop.xlane.xlu2 %270 }
  0xa6   : > { %v265_v23 = vmul.f32 %v263_v18, %v252_v21  ;;  %v256_v24 = vpop.xlane.xlu1 %255  ;;  %v301_v33 = vperm.slane %v271_v27, %v283_v22 }
  0xa7   : > { %v267_v31 = vmul.f32 %v263_v18, %v256_v24 }
  0xa8   : > { %v284_v28 = vperm.slane %v265_v23, %v283_v22  ;;  %v302_v41 = vsel %vm285_vm1, %v301_v33, %v300_v32 }
  0xa9   : > { %v292_v36 = vperm.slane %v267_v31, %v291_v30 }
  0xaa   : > { %v286_v34 = vsel %vm285_vm1, %v284_v28, %v282_v29 }
  0xab   : > { %v290_v40 = vsel %vm289_vm2, %v288_v35, %v286_v34 }
  0xac   : > { %v294_v44 = vsel %vm293_vm3, %v292_v36, %v290_v40 }
  0xad   : > { %v273_v37 = vpop.xlane.xlu0 %272 }
  0xae   : > { %v303_v38 = vperm.slane %v273_v37, %v287_v25  ;;  %v275_v39 = vpop.xlane.xlu1 %274 }
  0xaf   : > { %v305_v42 = vperm.slane %v275_v39, %v291_v30 }
  0xb0   : > { %v304_v43 = vsel %vm289_vm2, %v303_v38, %v302_v41 }
  0xb1   : > { %v306_v45 = vsel %vm293_vm3, %v305_v42, %v304_v43 }
  0xb2   : > { %v309_v46 = vsel %vm308_vm4, %v294_v44, %v306_v45 }
  0xb3   : > { %530 = vmatmul.msk.f32.vlgmr.msra.gmra.mxu0 %vm320_vm5, %v309_v46 }
 0x130   : > { %v341_v49 = vpop.f32.mrf.mxu0 }
 0x131   : > { %v342_v50 = vadd.f32 %v597_v48, %v341_v49 }
 0x133   : > { %v344_v51 = vmax.f32 %v342_v50, 0.0 }
 0x135   : > { %532 = vmatmul.msk.f32.vlgmr.msra.gmra.mxu1 %vm348_vm7, %v344_v51 }
 0x1b2   : > { %v373_v56 = vpop.f32.mrf.mxu1 }
 0x1b3   : > { %v374_v57 = vadd.f32 %v598_v55, %v373_v56 }
 0x1b5   : > { %v377_v58 = vrot.slane %v374_v57, 1 }
 0x1b7   : > { %v379_v59 = vadd.f32 %v377_v58, %v374_v57 }
 0x1b9   : > { %v533_v60 = vmul.f32 -1.442695, %v379_v59 }
 0x1bb   : > { %601 = vpow2.f32 %v533_v60 }
 0x1c1   : > { %v602_v61 = vpop.eup %601 }
 0x1c2   : > { %v383_v62 = vadd.f32 1.0, %v602_v61 }
 0x1c4   : > { %603 = vrcp.f32 %v383_v62  ;;  %v395_v6 = vand.u32 2147483648, %v383_v62  ;;  %v393_v8 = vand.u32 2147483647, %v383_v62  ;;  %vm389_vm9 = vweird.f32 %v383_v62 }
 0x1c6   : > { %v396_v10 = vor.u32 1.1754944e-38, %v395_v6  ;;  %vm394_vm11 = vcmp.eq.f32.partialorder %v393_v8, 8.507059e+37 }
 0x1ca   : > { %v604_v63 = vpop.eup %603 }
 0x1cb   : > { %v385_v4 = vmul.f32 %v604_v63, %v383_v62  ;;  %vm390_vm8 = vweird.f32 %v604_v63 }
 0x1cc   : > { %vm391_vm10 = vmor %vm389_vm9, %vm390_vm8 }
 0x1cd   : > { %v386_v5 = vsub.f32 1.0, %v385_v4 }
 0x1cf   : > { %v387_v7 = vmul.f32 %v604_v63, %v386_v5 }
 0x1d1   : > { %v388_v9 = vadd.f32 %v604_v63, %v387_v7 }
 0x1d3   : > { %v392_v11 = vsel %vm391_vm10, %v604_v63, %v388_v9 }
 0x1d4   : > { %v397_v12 = vsel %vm394_vm11, %v396_v10, %v392_v11 }
 0x1d5   : > { %v399_v13 = vperm.slane %v397_v12, 0 }
 0x1d7   : > { %416 = vperm.xlu1 %594, %v399_v13   ;;  %410 = vperm.xlu0 %593, %v399_v13  }
 0x1d8   : > { %404 = vperm.xlu2 %592, %v399_v13  }
 0x1df   : > { %596 = vset.pattern.permute.xlu0 %v420_v14 }
 0x1e0   : > { %595 = vset.pattern.permute.xlu2 %v420_v14 }
 0x1e8   : > { %422 = vperm.xlu2 %595, %v399_v13  }
 0x232   : > { %v405_v15 = vpop.permute.xlu2 %404 }
 0x233   : > { %v424_v16 = vmul.f32 %v405_v15, %v834_v0 }
 0x235   : > { %428 = vst [vmem:[%s244_s29] sm:$0xff] %v424_v16 }
 0x242   : > { %v423_v17 = vpop.permute.xlu2 %422 }
 0x243   : > { %v427_v18 = vmul.f32 %v423_v17, %v843_v3 }
 0x245   : > { %431 = vst [vmem:[%s244_s29 + $0x18] sm:$0xff] %v427_v18 }
 0x249   : > { %v417_v19 = vpop.permute.xlu1 %416  ;;  %v411_v20 = vpop.permute.xlu0 %410 }
 0x24a   : > { %v426_v0 = vmul.f32 %v417_v19, %v836_v1  ;;  %v425_v21 = vmul.f32 %v411_v20, %v841_v2 }
 0x24c   : > { %430 = vst [vmem:[%s244_s29 + $0x10] sm:$0xff] %v426_v0 }
 0x24d   : > { %429 = vst [vmem:[%s244_s29 + $0x8] sm:$0xff] %v425_v21 }
 0x24e   : > { %662 = shalt.err (!%p659_p4)
}
 0x24f   : > { %s706_s12 = smov 128   ;;  %s707_s25 = smov 8  }
 0x250   : > { %543 = dma.vmem_to_hbm [thread:$0]  (%p788_p11), %s446_s26, 512, %s448_s8, %s433_s22, %s706_s12, %s706_s12, %s707_s25  }
 0x251 PF: > { %s462_s29 = sand.u32 1, %s689_s18   ;;  %p921_p7 = scmp.ge.s32.totalorder %s701_s21, 2 }
 0x252   : > { %s463_s13 = scalar_lea.sflag [#allocation4], %s462_s29 }
 0x253   : > { %p550_p5 = pnand %p921_p7, %p792_p12 }
 0x255   : > { %p551_p8 = pneg %p550_p5 }
 0x257   : > { %684 = dma.done.wait (%p551_p8), %s463_s13, 512  }
 0x258   : > { %686 = vsyncadd (%p551_p8), %s463_s13, 4294966784  ;;  %p18_p10 = scmp.ge.s32.totalorder %s763_s24, 4   ;;  %s922_s18 = smov %s693_s19 }
 0x259   : > { %s923_s19 = smov %s697_s20  ;;  %s924_s20 = smov %s775_s27 }
 0x25a   : > { %s925_s21 = smov %s763_s24  ;;  %20 = sbr.rel (!%p18_p10) target bundleno = 5 (0x5), region = 85 }
 0x25f   :  { %469 = vsyncpa [#allocation3], 1 }
 0x260   :  { %471 = vsyncpa [#allocation3 + $0x1], 1 }
 0x261   :  { %472 = vsyncpa [#allocation4], 1 }
 0x262   :  { %474 = vsyncpa [#allocation4 + $0x1], 1 }

</bundles_post_ra>
